<compile_context>
chip_gen: v7x
topology: tpu7x:2x2x1
jax: 0.10.0
libtpu: 0.0.40
codegen_flags: <defaults>
</compile_context>

<pallas_src>
import functools

import jax
import jax.numpy as jnp
from jax import lax
from jax.experimental import pallas as pl
from jax.experimental.pallas import tpu as pltpu
import numpy as np

LABEL_SMOOTHING = 1e-6
DECAY_FACTOR = 1.0
_NEG_INF = -1e30


def _round_up(v, m):
    return ((v + m - 1) // m) * m


def _cdiv(a, b):
    return (a + b - 1) // b


def _tpu_defaults():
    """Generation-aware (vmem_limit_bytes, max batch tile).

    v5e/v6e have 128 MiB physical VMEM -> larger limit & tiles;
    v7x has 64 MiB per TensorCore -> conservative sizing.
    """
    vmem_phys = 64 * 1024 * 1024
    try:
        vmem_phys = int(pltpu.get_tpu_info().vmem_capacity_bytes)
    except Exception:
        pass
    if vmem_phys >= 100 * 1024 * 1024:       # v5e / v6e
        return 64 * 1024 * 1024, 1024
    return 32 * 1024 * 1024, 512             # v7x


_VMEM_LIMIT_BYTES, _MAX_BATCH_TILE = _tpu_defaults()


def _choose_tiling(b, max_tile=_MAX_BATCH_TILE, min_tiles=2):
    """Pick (block_b, b_pad).  The tile is a multiple of 8 rows and is never
    shrunk to fit an awkward B (B is padded instead), and the grid always has
    >= 2 tiles so both of v7x's TensorCores get work (harmless on 1-TC gens)."""
    block_b = max(8, min(max_tile, _round_up(_cdiv(b, min_tiles), 8)))
    num_tiles = max(min_tiles, _cdiv(b, block_b))
    return block_b, num_tiles * block_b


def _one_hot_from_soft(t):
    """one_hot(argmax(t, axis=1)) from lane-friendly ops (first-max tie-break)."""
    b, c = t.shape
    col = lax.broadcasted_iota(jnp.int32, (b, c), 1)
    row_max = jnp.max(t, axis=1, keepdims=True)
    is_max = t == row_max
    first_idx = jnp.min(jnp.where(is_max, col, c), axis=1, keepdims=True)  # (B,1)
    return (col == first_idx).astype(jnp.float32)                          # (B,C)


# --------------------------- centroid update kernel ---------------------------
def _centroid_kernel(zaug_ref, t_ref, ly_ref, out_ref, acc_ref):
    step = pl.program_id(0)

    @pl.when(step == 0)
    def _():
        acc_ref[...] = jnp.zeros_like(acc_ref)

    class_mask = _one_hot_from_soft(t_ref[...])                     # (TB, Cp)
    # One matmul accumulates both per-class sums and counts:
    #   class_mask.T @ [z | valid | 0...] -> (Cp, Dp+128)
    # TODO(synk): on v6e/v7x casting class_mask (exact 0/1) to bf16 would hit
    # the native MXU path; kept f32 so learnt_y matches the reference bit-tight.
    acc_ref[...] += lax.dot_general(
        class_mask, zaug_ref[...], (((0,), (0,)), ((), ())),
        preferred_element_type=jnp.float32)

    @pl.when(step == pl.num_programs(0) - 1)
    def _():
        ly = ly_ref[...]                                            # (Cp, Dp)
        d_pad = ly.shape[1]
        acc = acc_ref[...]
        sum_z = acc[:, :d_pad]
        count = acc[:, d_pad:d_pad + 1]                             # (Cp, 1)
        centroids = sum_z / jnp.maximum(count, 1e-12)
        # TODO(synk): `count > 0` differs from the reference's any(centroids != 0)
        # only if a class's samples sum exactly to zero (pathological).
        updated = jnp.where(count > 0.0, centroids, ly)
        out_ref[...] = DECAY_FACTOR * updated + (1.0 - DECAY_FACTOR) * ly


@functools.partial(jax.jit, static_argnames=("block_b", "b_pad"))
def _centroid_update_impl(x, target, learnt_y, *, block_b, b_pad):
    b, d = x.shape
    c = target.shape[1]
    d_pad = _round_up(d, 128)
    c_pad = _round_up(c, 128)
    d_aug = d_pad + 128        # extra 128-lane slab; lane 0 carries row validity

    x_p = jnp.pad(x, ((0, b_pad - b), (0, d_pad - d)))
    valid = (jnp.arange(b_pad) < b).astype(x.dtype)[:, None]        # (Bp, 1)
    aug = jnp.pad(valid, ((0, 0), (0, 127)))                        # (Bp, 128)
    z_aug = jnp.concatenate([x_p, aug], axis=1)                     # (Bp, Daug)
    t_p = jnp.pad(target, ((0, b_pad - b), (0, c_pad - c)))
    ly_p = jnp.pad(learnt_y, ((0, c_pad - c), (0, d_pad - d)))

    num_tiles = b_pad // block_b
    out = pl.pallas_call(
        _centroid_kernel,
        out_shape=jax.ShapeDtypeStruct((c_pad, d_pad), jnp.float32),
        grid_spec=pltpu.PrefetchScalarGridSpec(
            num_scalar_prefetch=0,
            grid=(num_tiles,),
            in_specs=[
                pl.BlockSpec((block_b, d_aug), lambda i: (i, 0)),   # [z|valid] tile
                pl.BlockSpec((block_b, c_pad), lambda i: (i, 0)),   # target tile
                pl.BlockSpec((c_pad, d_pad), lambda i: (0, 0)),     # learnt_y (pad)
            ],
            out_specs=pl.BlockSpec((c_pad, d_pad), lambda i: (0, 0)),
            scratch_shapes=[pltpu.VMEM((c_pad, d_aug), jnp.float32)],
        ),
        compiler_params=pltpu.CompilerParams(
            dimension_semantics=("arbitrary",),
            vmem_limit_bytes=_VMEM_LIMIT_BYTES),
    )(z_aug, t_p, ly_p)
    return out[:c, :d]


# -------------------------------- loss kernel ---------------------------------
def _loss_kernel(x_ref, ts_ref, lyt_ref, lysq_ref, cmask_ref, out_ref):
    x = x_ref[...]            # (TB, Dp) f32
    t_smooth = ts_ref[...]    # (TB, Cp) f32, pre-smoothed; 0 on padded rows/classes
    ly_neg2t = lyt_ref[...]   # (Dp, Cp) bf16  == (-2*learnt_y)^T  (pre-cast cache)
    ly_sq = lysq_ref[...]     # (1, Cp)  f32   ||learnt_y||^2 (0 on padded classes)
    cmask = cmask_ref[...]    # (1, Cp)  f32   1 for real classes, 0 for padding

    # ---- pairwise_dist(x, learnt_y): bf16 MXU, f32 accumulate; -2 folded ----
    na = jnp.sum(x * x, axis=1, keepdims=True)                       # (TB, 1)
    xyT = jnp.dot(x.astype(jnp.bfloat16), ly_neg2t,
                  preferred_element_type=jnp.float32)                # (TB, Cp)
    dist = jnp.sqrt(jnp.maximum(na + xyT + ly_sq, 1e-12))

    # ---- softmax(-dist) over real classes only (f32 VPU; EUP reciprocal) ----
    s = jnp.where(cmask > 0.0, -dist, _NEG_INF)
    s = s - jnp.max(s, axis=1, keepdims=True)
    e = jnp.exp(s)                                                   # padded -> 0
    inv = pl.reciprocal(jnp.sum(e, axis=1, keepdims=True), approx=True)
    logits = e * inv

    # ---- CE with soft targets: log_softmax(logits) over real classes.
    # max(logits) == exp(0)*inv == inv, so the row-max is reused (no 2nd XLU
    # reduce).  Padded classes are masked out of the logsumexp.
    lmax = inv
    zexp = jnp.exp(logits - lmax) * cmask
    lse = jnp.log(jnp.sum(zexp, axis=1, keepdims=True)) + lmax
    logp = logits - lse

    # Padded rows / classes have t_smooth == 0 -> contribute exactly 0.
    prod = -t_smooth * logp                                          # (TB, Cp)
    tb, cp = prod.shape
    # Lane-dense (8, Cp) partial via VPU adds (no full 2-D XLU reduce, no
    # scalar broadcast); the final reduction finishes in the wrapper.
    out_ref[...] = jnp.sum(prod.reshape(tb // 8, 8, cp), axis=0)[None]


@functools.partial(jax.jit, static_argnames=("block_b", "b_pad"))
def _lwal_loss_impl(x, target, ly_neg2t_bf16, ly_sq, cmask, *, block_b, b_pad):
    b, d = x.shape
    c = target.shape[1]
    d_pad, c_pad = ly_neg2t_bf16.shape

    x_p = jnp.pad(x, ((0, b_pad - b), (0, d_pad - d)))
    # Pre-smoothed targets; zero padding masks both padded rows and classes
    # (with raw targets, padded rows would pick up a spurious eps/C term).
    t_smooth = target * (1.0 - LABEL_SMOOTHING) + LABEL_SMOOTHING / c
    t_smooth = jnp.pad(t_smooth, ((0, b_pad - b), (0, c_pad - c)))

    num_tiles = b_pad // block_b
    partials = pl.pallas_call(
        _loss_kernel,
        out_shape=jax.ShapeDtypeStruct((num_tiles, 8, c_pad), jnp.float32),
        grid_spec=pltpu.PrefetchScalarGridSpec(
            num_scalar_prefetch=0,
            grid=(num_tiles,),
            in_specs=[
                pl.BlockSpec((block_b, d_pad), lambda i: (i, 0)),   # x tile
                pl.BlockSpec((block_b, c_pad), lambda i: (i, 0)),   # t_smooth tile
                # TODO(synk): pipeline_mode=pl.Buffered(1) on these three
                # grid-invariant operands would save one D*C bf16 VMEM buffer
                # on v7x; omitted for maximum compile portability.
                pl.BlockSpec((d_pad, c_pad), lambda i: (0, 0)),     # (-2*ly)^T bf16
                pl.BlockSpec((1, c_pad), lambda i: (0, 0)),         # ||ly||^2
                pl.BlockSpec((1, c_pad), lambda i: (0, 0)),         # class mask
            ],
            out_specs=pl.BlockSpec((1, 8, c_pad), lambda i: (i, 0, 0)),
        ),
        compiler_params=pltpu.CompilerParams(
            dimension_semantics=("parallel",),   # batch tiles shard across TCs
            vmem_limit_bytes=_VMEM_LIMIT_BYTES),
    )(x_p, t_smooth, ly_neg2t_bf16, ly_sq, cmask)

    return jnp.sum(partials) / b


# --------------------------------- module -------------------------------------
class LearningWithAdaptiveLabelsPallas:
    """JAX/Pallas port of timm's LearningWithAdaptiveLabels forward pass."""

    def __init__(self, latent_dim, num_classes, stationary_steps, current_step=1):
        self.latent_dim = latent_dim
        self.num_classes = num_classes
        self.stationary_steps = stationary_steps
        self.current_step = current_step
        # TODO(synk): on v6e/v7x padding C to a multiple of 256 matches the
        # 2x256 MXU N-dim exactly; 128 keeps every vector op lane-dense on all gens.
        self.d_pad = _round_up(latent_dim, 128)
        self.c_pad = _round_up(num_classes, 128)
        self._class_mask = (jnp.arange(self.c_pad) < num_classes
                            ).astype(jnp.float32)[None, :]           # (1, Cp)
        self.learnt_y = jnp.eye(num_classes, latent_dim, dtype=jnp.float32)
        self._refresh_learnt_y_cache()

    def _refresh_learnt_y_cache(self):
        # learnt_y only changes on update steps; cache the padded, transposed,
        # -2-folded bf16 copy and the squared norms so the per-step loss kernel
        # never recomputes them.
        ly = self.learnt_y
        c, d = ly.shape
        ly_p = jnp.pad(ly, ((0, self.c_pad - c), (0, self.d_pad - d)))
        self._ly_neg2t_bf16 = (-2.0 * ly_p).T.astype(jnp.bfloat16)    # (Dp, Cp)
        self._ly_sq = jnp.sum(ly_p * ly_p, axis=1)[None, :]           # (1, Cp) f32

    def get_learnt_y(self):
        return self.learnt_y

    def __call__(self, x, target):
        assert x.shape[0] == target.shape[0]
        block_b, b_pad = _choose_tiling(x.shape[0])
        if self.current_step % self.stationary_steps == 0:
            # centroids are detached in PyTorch; no grads tracked here anyway.
            self.learnt_y = _centroid_update_impl(
                x, target, self.learnt_y, block_b=block_b, b_pad=b_pad)
            self._refresh_learnt_y_cache()
        self.current_step += 1
        em_loss = _lwal_loss_impl(
            x, target, self._ly_neg2t_bf16, self._ly_sq, self._class_mask,
            block_b=block_b, b_pad=b_pad)
        # NOTE: the reference also computes cos_repel_loss_z(x, target, C) and
        # then discards it (em_loss = input_loss only), so it is omitted here.
        return em_loss, self.learnt_y


# ---------------------------- pure-JAX reference ----------------------------
def reference_forward(x, target, learnt_y, do_update, num_classes):
    if do_update:
        true_y = jnp.argmax(target, axis=1)
        cm = jax.nn.one_hot(true_y, num_classes, dtype=jnp.float32)
        sum_z = cm.T @ x
        cnt = jnp.maximum(jnp.sum(cm, axis=0), 1e-12)[:, None]
        centroids = sum_z / cnt
        nz = jnp.any(centroids != 0, axis=1, keepdims=True)
        updated = jnp.where(nz, centroids, learnt_y)
        learnt_y = DECAY_FACTOR * updated + (1.0 - DECAY_FACTOR) * learnt_y
    na = jnp.sum(x ** 2, axis=1)[:, None]
    nb = jnp.sum(learnt_y ** 2, axis=1)[None, :]
    dist = jnp.sqrt(jnp.maximum(na - 2.0 * x @ learnt_y.T + nb, 1e-12))
    logits = jax.nn.softmax(-dist, axis=1)
    logp = jax.nn.log_softmax(logits, axis=1)
    ts = target * (1.0 - LABEL_SMOOTHING) + LABEL_SMOOTHING / num_classes
    loss = jnp.mean(jnp.sum(-ts * logp, axis=1))
    return loss, learnt_y


if __name__ == "__main__":
    B, LATENT_DIM, NUM_CLASSES = 8, 32, 8
    key = jax.random.PRNGKey(0)
    kx, ky = jax.random.split(key)
    x = jax.random.normal(kx, (B, LATENT_DIM), dtype=jnp.float32)
    labels = jax.random.randint(ky, (B,), 0, NUM_CLASSES)
    target = jax.nn.one_hot(labels, NUM_CLASSES, dtype=jnp.float32)

    # stationary_steps=1 so the centroid-update kernel path is exercised too.
    module = LearningWithAdaptiveLabelsPallas(
        latent_dim=LATENT_DIM, num_classes=NUM_CLASSES,
        stationary_steps=1, current_step=1)

    em_loss, learnt_y = module(x, target)
    jax.block_until_ready((em_loss, learnt_y))

    ref_loss, ref_ly = reference_forward(
        x, target, jnp.eye(NUM_CLASSES, LATENT_DIM, dtype=jnp.float32),
        do_update=True, num_classes=NUM_CLASSES)

    # learnt_y: f32 one-hot-mask matmul -> essentially exact vs reference.
    np.testing.assert_allclose(np.asarray(learnt_y), np.asarray(ref_ly),
                               rtol=1e-4, atol=1e-5)
    # loss: bf16-in/f32-acc distance matmul + EUP approx reciprocal -> relaxed tol.
    np.testing.assert_allclose(float(em_loss), float(ref_loss),
                               rtol=2e-3, atol=1e-4)
    print("KERNEL_OK")
</pallas_src>

<mosaic_0001>
module attributes {stable_mosaic.version = 11 : i64} {
  func.func @_centroid_kernel(%arg0: i32, %arg1: memref<8x256xf32, #tpu.memory_space<vmem>>, %arg2: memref<8x128xf32, #tpu.memory_space<vmem>>, %arg3: memref<128x128xf32, #tpu.memory_space<vmem>>, %arg4: memref<128x128xf32, #tpu.memory_space<vmem>>, %arg5: memref<128x256xf32, #tpu.memory_space<vmem>>) attributes {dimension_semantics = [#tpu.dimension_semantics<arbitrary>], iteration_bounds = array<i64: 2>, scalar_prefetch = 0 : i64, scratch_operands = 1 : i64, tpu.core_type = #tpu.core_type<tc>, window_params = [{transform_indices = @transform_0, window_bounds = array<i64: 8, 256>}, {transform_indices = @transform_1, window_bounds = array<i64: 8, 128>}, {pipeline_mode = #tpu.pipeline_mode<synchronous>, transform_indices = @transform_2, window_bounds = array<i64: 128, 128>}, {pipeline_mode = #tpu.pipeline_mode<synchronous>, transform_indices = @transform_3, window_bounds = array<i64: 128, 128>}]} {
    %c0_i32 = arith.constant 0 : i32
    %0 = arith.cmpi eq, %arg0, %c0_i32 : i32
    %1 = arith.extui %0 : i1 to i32
    %c0_i32_0 = arith.constant 0 : i32
    %2 = arith.cmpi ne, %1, %c0_i32_0 : i32
    scf.if %2 {
      %cst_11 = arith.constant 0.000000e+00 : f32
      %25 = vector.broadcast %cst_11 : f32 to vector<128x256xf32>
      %c0_12 = arith.constant 0 : index
      %c0_13 = arith.constant 0 : index
      %26 = vector.load %arg5[%c0_12, %c0_13] : memref<128x256xf32, #tpu.memory_space<vmem>>, vector<128x256xf32>
      tpu.vector_store %arg5[%c0_12, %c0_13], %25 {strides = array<i32>} : memref<128x256xf32, #tpu.memory_space<vmem>>, vector<128x256xf32>,
    } else {
    }
    %c0 = arith.constant 0 : index
    %c0_1 = arith.constant 0 : index
    %3 = vector.load %arg2[%c0, %c0_1] : memref<8x128xf32, #tpu.memory_space<vmem>>, vector<8x128xf32>
    %4 = tpu.iota {dimensions = array<i32: 1>} : vector<8x128xi32>
    %cst = arith.constant dense<0xFF800000> : vector<8xf32>
    %5 = vector.multi_reduction <maximumf>, %3, %cst [1] : vector<8x128xf32> to vector<8xf32>
    %6 = vector.shape_cast %5 : vector<8xf32> to vector<8x1xf32>
    %7 = vector.broadcast %6 : vector<8x1xf32> to vector<8x128xf32>
    %8 = arith.cmpf oeq, %3, %7 : vector<8x128xf32>
    %c128_i32 = arith.constant 128 : i32
    %9 = vector.broadcast %c128_i32 : i32 to vector<8x128xi32>
    %10 = arith.select %8, %4, %9 : vector<8x128xi1>, vector<8x128xi32>
    %cst_2 = arith.constant dense<2147483647> : vector<8xi32>
    %11 = vector.multi_reduction <minsi>, %10, %cst_2 [1] : vector<8x128xi32> to vector<8xi32>
    %12 = vector.shape_cast %11 : vector<8xi32> to vector<8x1xi32>
    %13 = vector.broadcast %12 : vector<8x1xi32> to vector<8x128xi32>
    %14 = arith.cmpi eq, %4, %13 : vector<8x128xi32>
    %15 = arith.extui %14 : vector<8x128xi1> to vector<8x128xi32>
    %16 = arith.sitofp %15 : vector<8x128xi32> to vector<8x128xf32>
    %c0_3 = arith.constant 0 : index
    %c0_4 = arith.constant 0 : index
    %17 = vector.load %arg5[%c0_3, %c0_4] : memref<128x256xf32, #tpu.memory_space<vmem>>, vector<128x256xf32>
    %c0_5 = arith.constant 0 : index
    %c0_6 = arith.constant 0 : index
    %18 = vector.load %arg1[%c0_5, %c0_6] : memref<8x256xf32, #tpu.memory_space<vmem>>, vector<8x256xf32>
    %cst_7 = arith.constant dense<0.000000e+00> : vector<128x256xf32>
    %19 = tpu.matmul %16, %18, %cst_7 {dimension_numbers = #tpu.dot_dimension_numbers<[0], [0], [1], [1], [0, 1, 1, 1], [], []>} : vector<8x128xf32>, vector<8x256xf32>, vector<128x256xf32> -> vector<128x256xf32>
    %20 = arith.addf %17, %19 : vector<128x256xf32>
    %c0_8 = arith.constant 0 : index
    %c0_9 = arith.constant 0 : index
    %21 = vector.load %arg5[%c0_8, %c0_9] : memref<128x256xf32, #tpu.memory_space<vmem>>, vector<128x256xf32>
    tpu.vector_store %arg5[%c0_8, %c0_9], %20 {strides = array<i32>} : memref<128x256xf32, #tpu.memory_space<vmem>>, vector<128x256xf32>,
    %c1_i32 = arith.constant 1 : i32
    %22 = arith.cmpi eq, %arg0, %c1_i32 : i32
    %23 = arith.extui %22 : i1 to i32
    %c0_i32_10 = arith.constant 0 : i32
    %24 = arith.cmpi ne, %23, %c0_i32_10 : i32
    scf.if %24 {
      %c0_11 = arith.constant 0 : index
      %c0_12 = arith.constant 0 : index
      %25 = vector.load %arg3[%c0_11, %c0_12] : memref<128x128xf32, #tpu.memory_space<vmem>>, vector<128x128xf32>
      %c0_13 = arith.constant 0 : index
      %c0_14 = arith.constant 0 : index
      %26 = vector.load %arg5[%c0_13, %c0_14] : memref<128x256xf32, #tpu.memory_space<vmem>>, vector<128x256xf32>
      %27 = vector.extract_strided_slice %26 {offsets = [0, 0], sizes = [128, 128], strides = [1, 1]} : vector<128x256xf32> to vector<128x128xf32>
      %28 = vector.extract_strided_slice %26 {offsets = [0, 128], sizes = [128, 1], strides = [1, 1]} : vector<128x256xf32> to vector<128x1xf32>
      %cst_15 = arith.constant 9.99999996E-13 : f32
      %29 = vector.broadcast %cst_15 : f32 to vector<128x1xf32>
      %30 = arith.maximumf %28, %29 : vector<128x1xf32>
      %31 = vector.broadcast %30 : vector<128x1xf32> to vector<128x128xf32>
      %32 = arith.divf %27, %31 : vector<128x128xf32>
      %cst_16 = arith.constant 0.000000e+00 : f32
      %33 = vector.broadcast %cst_16 : f32 to vector<128x1xf32>
      %34 = arith.cmpf ogt, %28, %33 : vector<128x1xf32>
      %35 = vector.shape_cast %34 : vector<128x1xi1> to vector<128x1xi1>
      %36 = vector.broadcast %35 : vector<128x1xi1> to vector<128x128xi1>
      %37 = arith.select %36, %32, %25 : vector<128x128xi1>, vector<128x128xf32>
      %cst_17 = arith.constant 1.000000e+00 : f32
      %38 = vector.broadcast %cst_17 : f32 to vector<128x128xf32>
      %39 = arith.mulf %38, %37 : vector<128x128xf32>
      %cst_18 = arith.constant 0.000000e+00 : f32
      %40 = vector.broadcast %cst_18 : f32 to vector<128x128xf32>
      %41 = arith.mulf %40, %25 : vector<128x128xf32>
      %42 = arith.addf %39, %41 : vector<128x128xf32>
      %c0_19 = arith.constant 0 : index
      %c0_20 = arith.constant 0 : index
      %43 = vector.load %arg4[%c0_19, %c0_20] : memref<128x128xf32, #tpu.memory_space<vmem>>, vector<128x128xf32>
      tpu.vector_store %arg4[%c0_19, %c0_20], %42 {strides = array<i32>} : memref<128x128xf32, #tpu.memory_space<vmem>>, vector<128x128xf32>,
    } else {
    }
    return
  }
  func.func @transform_0(%arg0: i32) -> (i32, i32) {
    %c0_i32 = arith.constant 0 : i32
    %c0_i32_0 = arith.constant 0 : i32
    return %arg0, %c0_i32 : i32, i32
  }
  func.func @transform_1(%arg0: i32) -> (i32, i32) {
    %c0_i32 = arith.constant 0 : i32
    %c0_i32_0 = arith.constant 0 : i32
    return %arg0, %c0_i32 : i32, i32
  }
  func.func @transform_2(%arg0: i32) -> (i32, i32) {
    %c0_i32 = arith.constant 0 : i32
    %c0_i32_0 = arith.constant 0 : i32
    %c0_i32_1 = arith.constant 0 : i32
    return %c0_i32, %c0_i32_0 : i32, i32
  }
  func.func @transform_3(%arg0: i32) -> (i32, i32) {
    %c0_i32 = arith.constant 0 : i32
    %c0_i32_0 = arith.constant 0 : i32
    %c0_i32_1 = arith.constant 0 : i32
    return %c0_i32, %c0_i32_0 : i32, i32
  }
}

</mosaic_0001>

<bundles_post_ra>
// kernel: _centroid_update_impl.1
= control target key start
LH: loop header
LB: loop body
LE: loop exit
PB: predicated region body
PF: predicated region fallthrough
CT: control target
= control target key end

     0   :  { %s1060_s12 = smov 0   ;;  %s1232_s0 = inlined_call_operand.vmem [shape: f32[16,256], index: 0, kind: input, shape index: {}]   ;;  %s1233_s1 = inlined_call_operand.vmem [shape: f32[16,128], index: 1, kind: input, shape index: {}]   ;;  %s1234_s2 = inlined_call_operand.vmem [shape: f32[128,128], index: 2, kind: input, shape index: {}]   ;;  %s1235_s3 = inlined_call_operand.vmem [shape: f32[128,128], index: 3, kind: output, shape index: {}]  }
   0x1 LB: > { %s1066_s13 = sadd.s32 4294967295, %s1035_s12   ;;  %p956_p0 = scmp.ge.s32.totalorder %s1035_s12, 1  ;;  %s1035_s12 = sphi %s1060_s12, %s13_s12  }
   0x2   : > { %p141_p1 = scmp.lt.s32.totalorder %s1035_s12, 3 }
   0x4   : > { %p142_p2 = pnand %p956_p0, %p141_p1 }
   0x5   : > { %p164_p3 = scmp.lt.s32.totalorder (!%p142_p2), %s1066_s13, 1  ;;  %p960_p4 = scmp.ne.s32.totalorder (!%p142_p2), %s1066_s13, 0 }
   0x6   : > { %145 = sbr.rel (%p142_p2) target bundleno = 1051 (0x41b), region = 32 }
   0xd   : > { %s165_s14 = scalar_select %p164_p3, %s1066_s13, 1 }
   0xe   : > { %176 = sbr.rel (%p960_p4) target bundleno = 31 (0x1f), region = 36  ;;  %v1037_v0 = vmov (!%p960_p4), 0.0  }
   0xf   : > { %s981_s15 = sshll.u32 %s165_s14, 4  ;;  %s959_s16 = sshll.u32 %s165_s14, 3  ;;  %177 = vst [vmem:[#allocation2] sm:$0xff] (!%p960_p4), %v1037_v0  ;;  %178 = vst [vmem:[#allocation2 + $0x8] sm:$0xff] (!%p960_p4), %v1037_v0 }
  0x10   : > { %s1075_s19 = scalar_lea.vmem %s1232_s0, %s981_s15  ;;  %s1080_s22 = scalar_lea.vmem %s1233_s1, %s959_s16  ;;  %179 = vst [vmem:[#allocation2 + $0x10] sm:$0xff] (!%p960_p4), %v1037_v0  ;;  %180 = vst [vmem:[#allocation2 + $0x18] sm:$0xff] (!%p960_p4), %v1037_v0 }
  0x11   : > { %181 = vst [vmem:[#allocation2 + $0x20] sm:$0xff] (!%p960_p4), %v1037_v0  ;;  %182 = vst [vmem:[#allocation2 + $0x28] sm:$0xff] (!%p960_p4), %v1037_v0 }
  0x12   : > { %183 = vst [vmem:[#allocation2 + $0x30] sm:$0xff] (!%p960_p4), %v1037_v0  ;;  %184 = vst [vmem:[#allocation2 + $0x38] sm:$0xff] (!%p960_p4), %v1037_v0 }
  0x13   : > { %185 = vst [vmem:[#allocation2 + $0x40] sm:$0xff] (!%p960_p4), %v1037_v0  ;;  %186 = vst [vmem:[#allocation2 + $0x48] sm:$0xff] (!%p960_p4), %v1037_v0 }
  0x14   : > { %187 = vst [vmem:[#allocation2 + $0x50] sm:$0xff] (!%p960_p4), %v1037_v0  ;;  %188 = vst [vmem:[#allocation2 + $0x58] sm:$0xff] (!%p960_p4), %v1037_v0 }
  0x15   : > { %189 = vst [vmem:[#allocation2 + $0x60] sm:$0xff] %v1037_v0  ;;  %190 = vst [vmem:[#allocation2 + $0x68] sm:$0xff] %v1037_v0 }
  0x16   : > { %191 = vst [vmem:[#allocation2 + $0x70] sm:$0xff] %v1037_v0  ;;  %192 = vst [vmem:[#allocation2 + $0x78] sm:$0xff] %v1037_v0 }
  0x17   : > { %193 = vst [vmem:[#allocation2 + $0x80] sm:$0xff] %v1037_v0  ;;  %194 = vst [vmem:[#allocation2 + $0x88] sm:$0xff] %v1037_v0 }
  0x18   : > { %195 = vst [vmem:[#allocation2 + $0x90] sm:$0xff] %v1037_v0  ;;  %196 = vst [vmem:[#allocation2 + $0x98] sm:$0xff] %v1037_v0 }
  0x19   : > { %197 = vst [vmem:[#allocation2 + $0xa0] sm:$0xff] %v1037_v0  ;;  %198 = vst [vmem:[#allocation2 + $0xa8] sm:$0xff] %v1037_v0 }
  0x1a   : > { %199 = vst [vmem:[#allocation2 + $0xb0] sm:$0xff] %v1037_v0  ;;  %200 = vst [vmem:[#allocation2 + $0xb8] sm:$0xff] %v1037_v0 }
  0x1b   : > { %201 = vst [vmem:[#allocation2 + $0xc0] sm:$0xff] %v1037_v0  ;;  %202 = vst [vmem:[#allocation2 + $0xc8] sm:$0xff] %v1037_v0 }
  0x1c   : > { %203 = vst [vmem:[#allocation2 + $0xd0] sm:$0xff] %v1037_v0  ;;  %204 = vst [vmem:[#allocation2 + $0xd8] sm:$0xff] %v1037_v0 }
  0x1d   : > { %205 = vst [vmem:[#allocation2 + $0xe0] sm:$0xff] %v1037_v0  ;;  %206 = vst [vmem:[#allocation2 + $0xe8] sm:$0xff] %v1037_v0 }
  0x1e   : > { %207 = vst [vmem:[#allocation2 + $0xf0] sm:$0xff] %v1037_v0  ;;  %208 = vst [vmem:[#allocation2 + $0xf8] sm:$0xff] %v1037_v0 }
  0x1f PF: > { %v209_v1 = vld [vmem:[%s1080_s22] sm:$0xff]  ;;  %v210_v2 = vlaneseq  ;;  %v1038_v12 = vmov 0.0   ;;  %v266_v13 = vld [vmem:[%s1075_s19 + $0x8] sm:$0xff]  ;;  %vm299_vm3 = vcmask 64512   ;;  %p978_p5 = scmp.ne.s32.totalorder %s1066_s13, 1 }
  0x20   : > { %212 = vmax.xlane.f32.xlu0 %v209_v1  ;;  %412 = vmatprep.mubr.f32.mxu0 %v1038_v12  ;;  %v265_v14 = vld [vmem:[%s1075_s19] sm:$0xff]  ;;  %v234_v38 = vld [vmem:[#allocation2 + $0x8] sm:$0xff] }
  0x21   : > { %v211_v3 = vand.u32 127, %v210_v2  ;;  %460 = vmatprep.mubr.f32.mxu1 %v1038_v12  ;;  %348 = vmatprep.subr.mxu0 %v266_v13  ;;  %v233_v37 = vld [vmem:[#allocation2] sm:$0xff]  ;;  %v235_v43 = vld [vmem:[#allocation2 + $0x10] sm:$0xff]  ;;  %v236_v44 = vld [vmem:[#allocation2 + $0x18] sm:$0xff] }
  0x22   : > { %982 = vmatprep.subr.mxu1 %v266_v13  ;;  %349 = vmatpush1.msra.mxu0 %v265_v14  ;;  %v237_v49 = vld [vmem:[#allocation2 + $0x20] sm:$0xff]  ;;  %v238_v50 = vld [vmem:[#allocation2 + $0x28] sm:$0xff] }
  0x23   : > { %983 = vmatpush1.msra.mxu1 %v265_v14  ;;  %v239_v55 = vld [vmem:[#allocation2 + $0x30] sm:$0xff]  ;;  %v240_v56 = vld [vmem:[#allocation2 + $0x38] sm:$0xff] }
  0x24   : > { %v241_v61 = vld [vmem:[#allocation2 + $0x40] sm:$0xff]  ;;  %v242_v62 = vld [vmem:[#allocation2 + $0x48] sm:$0xff] }
  0xad   : > { %v213_v4 = vpop.xlane.xlu0 %212 }
  0xae   : > { %vm214_vm0 = vcmp.eq.f32.partialorder %v209_v1, %v213_v4  ;;  %v244_v4 = vld [vmem:[#allocation2 + $0x58] sm:$0xff] }
  0xaf   : > { %v215_v5 = vsel %vm214_vm0, %v211_v3, 128 }
  0xb0   : > { %v217_v6 = vshra.s32 %v215_v5, 16  ;;  %v216_v8 = vand.u32 65535, %v215_v5 }
  0xb2   : > { %v219_v7 = vcvt.s32.f32 %v217_v6  ;;  %v218_v10 = vcvt.s32.f32 %v216_v8 }
  0xb4   : > { %220 = vmin.xlane.f32.xlu0 %v219_v7 }
 0x141   : > { %v221_v9 = vpop.xlane.xlu0 %220 }
 0x142   : > { %vm222_vm1 = vcmp.eq.f32.partialorder %v219_v7, %v221_v9  ;;  %v227_v15 = vcvt.f32.s32 %v221_v9  ;;  %v245_v9 = vld [vmem:[#allocation2 + $0x60] sm:$0xff] }
 0x143   : > { %v223_v11 = vsel %vm222_vm1, %v218_v10, inf  ;;  %v246_v10 = vld [vmem:[#allocation2 + $0x68] sm:$0xff] }
 0x144   : > { %224 = vmin.xlane.f32.xlu1 %v223_v11  ;;  %v228_v17 = vshll.u32 %v227_v15, 16  ;;  %v247_v15 = vld [vmem:[#allocation2 + $0x70] sm:$0xff] }
 0x1d1   : > { %v225_v16 = vpop.xlane.xlu1 %224 }
 0x1d2   : > { %v226_v18 = vcvt.f32.s32 %v225_v16  ;;  %v248_v16 = vld [vmem:[#allocation2 + $0x78] sm:$0xff] }
 0x1d4   : > { %v229_v19 = vadd.s32 %v228_v17, %v226_v18 }
 0x1d6   : > { %vm230_vm2 = vcmp.eq.s32.totalorder %v211_v3, %v229_v19  ;;  %v243_v3 = vld [vmem:[#allocation2 + $0x50] sm:$0xff] }
 0x1d7   : > { %v961_v20 = vsel %vm230_vm2, 1.0, %v1038_v12 }
 0x1d8   : > { %267 = vxpose.xlu1.b32.start.end [1/1] (short) %v961_v20, 128 }
 0x258   : > { %v283_v21 = vpop.trf.xlu1 }
 0x259   : > { %962 = vmatmul.mubr.msk.f32.vlgmr.msra.gmra.mrb[0].mxu0 %vm299_vm3, %v283_v21  ;;  %v249_v21 = vld [vmem:[#allocation2 + $0x80] sm:$0xff] }
 0x25a   : > { %418 = vmatprep.mubr.f32.mxu0 %v1038_v12 }
 0x25c   : > { %v284_v22 = vpop.trf.xlu1 }
 0x25d   : > { %963 = vmatmul.mubr.msk.f32.gmra.mrb[2].mxu0 %vm299_vm3, %v284_v22  ;;  %v250_v22 = vld [vmem:[#allocation2 + $0x88] sm:$0xff] }
 0x25e   : > { %424 = vmatprep.mubr.f32.mxu0 %v1038_v12 }
 0x260   : > { %v285_v23 = vpop.trf.xlu1 }
 0x261   : > { %964 = vmatmul.mubr.msk.f32.gmra.mrb[4].mxu0 %vm299_vm3, %v285_v23 }
 0x262   : > { %430 = vmatprep.mubr.f32.mxu0 %v1038_v12 }
 0x264   : > { %v286_v24 = vpop.trf.xlu1 }
 0x265   : > { %965 = vmatmul.mubr.msk.f32.gmra.mrb[6].mxu0 %vm299_vm3, %v286_v24 }
 0x266   : > { %436 = vmatprep.mubr.f32.mxu0 %v1038_v12 }
 0x268   : > { %v287_v25 = vpop.trf.xlu1 }
 0x269   : > { %966 = vmatmul.mubr.msk.f32.gmra.mrb[8].mxu0 %vm299_vm3, %v287_v25 }
 0x26a   : > { %442 = vmatprep.mubr.f32.mxu0 %v1038_v12 }
 0x26c   : > { %v288_v26 = vpop.trf.xlu1 }
 0x26d   : > { %967 = vmatmul.mubr.msk.f32.gmra.mrb[10].mxu0 %vm299_vm3, %v288_v26 }
 0x26e   : > { %448 = vmatprep.mubr.f32.mxu0 %v1038_v12 }
 0x270   : > { %v289_v27 = vpop.trf.xlu1 }
 0x271   : > { %968 = vmatmul.mubr.msk.f32.gmra.mrb[12].mxu0 %vm299_vm3, %v289_v27  ;;  %v251_v27 = vld [vmem:[#allocation2 + $0x90] sm:$0xff] }
 0x272   : > { %454 = vmatprep.mubr.f32.mxu0 %v1038_v12 }
 0x274   : > { %v290_v28 = vpop.trf.xlu1 }
 0x275   : > { %969 = vmatmul.mubr.msk.f32.gmra.mrb[14].mxu0 %vm299_vm3, %v290_v28  ;;  %v252_v28 = vld [vmem:[#allocation2 + $0x98] sm:$0xff] }
 0x278   : > { %v291_v29 = vpop.trf.xlu1 }
 0x279   : > { %970 = vmatmul.mubr.msk.f32.vlgmr.msra.gmra.mrb[0].mxu1 %vm299_vm3, %v291_v29 }
 0x27a   : > { %466 = vmatprep.mubr.f32.mxu1 %v1038_v12 }
 0x27c   : > { %v292_v30 = vpop.trf.xlu1 }
 0x27d   : > { %971 = vmatmul.mubr.msk.f32.gmra.mrb[2].mxu1 %vm299_vm3, %v292_v30 }
 0x27e   : > { %472 = vmatprep.mubr.f32.mxu1 %v1038_v12 }
 0x280   : > { %v293_v31 = vpop.trf.xlu1 }
 0x281   : > { %972 = vmatmul.mubr.msk.f32.gmra.mrb[4].mxu1 %vm299_vm3, %v293_v31 }
 0x282   : > { %478 = vmatprep.mubr.f32.mxu1 %v1038_v12 }
 0x284   : > { %v294_v32 = vpop.trf.xlu1 }
 0x285   : > { %973 = vmatmul.mubr.msk.f32.gmra.mrb[6].mxu1 %vm299_vm3, %v294_v32 }
 0x286   : > { %484 = vmatprep.mubr.f32.mxu1 %v1038_v12 }
 0x288   : > { %v295_v33 = vpop.trf.xlu1 }
 0x289   : > { %974 = vmatmul.mubr.msk.f32.gmra.mrb[8].mxu1 %vm299_vm3, %v295_v33  ;;  %v253_v33 = vld [vmem:[#allocation2 + $0xa0] sm:$0xff] }
 0x28a   : > { %490 = vmatprep.mubr.f32.mxu1 %v1038_v12 }
 0x28c   : > { %v296_v34 = vpop.trf.xlu1 }
 0x28d   : > { %975 = vmatmul.mubr.msk.f32.gmra.mrb[10].mxu1 %vm299_vm3, %v296_v34  ;;  %v254_v34 = vld [vmem:[#allocation2 + $0xa8] sm:$0xff] }
 0x28e   : > { %496 = vmatprep.mubr.f32.mxu1 %v1038_v12 }
 0x290   : > { %v297_v35 = vpop.trf.xlu1 }
 0x291   : > { %976 = vmatmul.mubr.msk.f32.gmra.mrb[12].mxu1 %vm299_vm3, %v297_v35 }
 0x292   : > { %502 = vmatprep.mubr.f32.mxu1 %v1038_v12 }
 0x294   : > { %v298_v36 = vpop.trf.xlu1 }
 0x295   : > { %977 = vmatmul.mubr.msk.f32.gmra.mrb[14].mxu1 %vm299_vm3, %v298_v36 }
 0x32c   : > { %v414_v39 = vpop.f32.mrb[0].mxu0 }
 0x32d   : > { %v509_v40 = vadd.f32 %v414_v39, %v233_v37  ;;  %v416_v41 = vpop.f32.mrb[1].mxu0  ;;  %v255_v39 = vld [vmem:[#allocation2 + $0xb0] sm:$0xff] }
 0x32e   : > { %v510_v42 = vadd.f32 %v416_v41, %v234_v38 }
 0x32f   : > { %541 = vst [vmem:[#allocation2] sm:$0xff] %v509_v40  ;;  %v256_v40 = vld [vmem:[#allocation2 + $0xb8] sm:$0xff] }
 0x330   : > { %542 = vst [vmem:[#allocation2 + $0x8] sm:$0xff] %v510_v42  ;;  %v420_v45 = vpop.f32.mrb[2].mxu0 }
 0x331   : > { %v511_v46 = vadd.f32 %v420_v45, %v235_v43  ;;  %v422_v47 = vpop.f32.mrb[3].mxu0  ;;  %v257_v45 = vld [vmem:[#allocation2 + $0xc0] sm:$0xff] }
 0x332   : > { %v512_v48 = vadd.f32 %v422_v47, %v236_v44 }
 0x333   : > { %543 = vst [vmem:[#allocation2 + $0x10] sm:$0xff] %v511_v46  ;;  %v258_v46 = vld [vmem:[#allocation2 + $0xc8] sm:$0xff] }
 0x334   : > { %544 = vst [vmem:[#allocation2 + $0x18] sm:$0xff] %v512_v48  ;;  %v426_v51 = vpop.f32.mrb[4].mxu0 }
 0x335   : > { %v513_v52 = vadd.f32 %v426_v51, %v237_v49  ;;  %v428_v53 = vpop.f32.mrb[5].mxu0  ;;  %v259_v51 = vld [vmem:[#allocation2 + $0xd0] sm:$0xff] }
 0x336   : > { %v514_v54 = vadd.f32 %v428_v53, %v238_v50 }
 0x337   : > { %545 = vst [vmem:[#allocation2 + $0x20] sm:$0xff] %v513_v52  ;;  %v260_v52 = vld [vmem:[#allocation2 + $0xd8] sm:$0xff] }
 0x338   : > { %546 = vst [vmem:[#allocation2 + $0x28] sm:$0xff] %v514_v54  ;;  %v432_v57 = vpop.f32.mrb[6].mxu0 }
 0x339   : > { %v515_v58 = vadd.f32 %v432_v57, %v239_v55  ;;  %v434_v59 = vpop.f32.mrb[7].mxu0  ;;  %v261_v57 = vld [vmem:[#allocation2 + $0xe0] sm:$0xff] }
 0x33a   : > { %v516_v60 = vadd.f32 %v434_v59, %v240_v56 }
 0x33b   : > { %547 = vst [vmem:[#allocation2 + $0x30] sm:$0xff] %v515_v58  ;;  %v262_v58 = vld [vmem:[#allocation2 + $0xe8] sm:$0xff] }
 0x33c   : > { %548 = vst [vmem:[#allocation2 + $0x38] sm:$0xff] %v516_v60  ;;  %v438_v63 = vpop.f32.mrb[8].mxu0 }
 0x33d   : > { %v517_v0 = vadd.f32 %v438_v63, %v241_v61  ;;  %v440_v1 = vpop.f32.mrb[9].mxu0  ;;  %v263_v63 = vld [vmem:[#allocation2 + $0xf0] sm:$0xff] }
 0x33e   : > { %v518_v2 = vadd.f32 %v440_v1, %v242_v62 }
 0x33f   : > { %549 = vst [vmem:[#allocation2 + $0x40] sm:$0xff] %v517_v0  ;;  %v264_v0 = vld [vmem:[#allocation2 + $0xf8] sm:$0xff] }
 0x340   : > { %550 = vst [vmem:[#allocation2 + $0x48] sm:$0xff] %v518_v2  ;;  %v444_v5 = vpop.f32.mrb[10].mxu0 }
 0x341   : > { %v519_v6 = vadd.f32 %v444_v5, %v243_v3  ;;  %v446_v7 = vpop.f32.mrb[11].mxu0  ;;  %v598_v5 = vld [vmem:[#allocation2 + $0x28] sm:$0xff] (!%p978_p5) }
 0x342   : > { %v520_v8 = vadd.f32 %v446_v7, %v244_v4  ;;  %vm755_vm7 = vcmp.gt.f32.partialorder (!%p978_p5), %v598_v5, 0.0 }
 0x343   : > { %551 = vst [vmem:[#allocation2 + $0x50] sm:$0xff] %v519_v6  ;;  %v594_v6 = vld [vmem:[#allocation2 + $0x8] sm:$0xff] (!%p978_p5)  ;;  %v600_v7 = vld [vmem:[#allocation2 + $0x38] sm:$0xff] (!%p978_p5) }
 0x344   : > { %552 = vst [vmem:[#allocation2 + $0x58] sm:$0xff] %v520_v8  ;;  %v450_v11 = vpop.f32.mrb[12].mxu0  ;;  %v1039_v8 = vmov (!%p978_p5), 0   ;;  %vm753_vm5 = vcmp.gt.f32.partialorder (!%p978_p5), %v594_v6, 0.0  ;;  %vm756_vm6 = vcmp.gt.f32.partialorder (!%p978_p5), %v600_v7, 0.0 }
 0x345   : > { %v521_v12 = vadd.f32 %v450_v11, %v245_v9  ;;  %v452_v13 = vpop.f32.mrb[13].mxu0  ;;  %996 = vset.pattern.permute.xlu1 (!%p978_p5), %v1039_v8  ;;  %995 = vset.pattern.permute.xlu0 (!%p978_p5), %v1039_v8  ;;  %v627_v9 = vmax.f32 (!%p978_p5), %v598_v5, 1e-12  ;;  %v596_v11 = vld [vmem:[#allocation2 + $0x18] sm:$0xff] (!%p978_p5) }
 0x346   : > { %v522_v14 = vadd.f32 %v452_v13, %v246_v10  ;;  %v625_v10 = vmax.f32 (!%p978_p5), %v594_v6, 1e-12  ;;  %v626_v13 = vmax.f32 (!%p978_p5), %v596_v11, 1e-12  ;;  %vm754_vm4 = vcmp.gt.f32.partialorder (!%p978_p5), %v596_v11, 0.0  ;;  %v593_v11 = vld [vmem:[#allocation2] sm:$0xff] (!%p978_p5) }
 0x347   : > { %553 = vst [vmem:[#allocation2 + $0x60] sm:$0xff] %v521_v12  ;;  %653 = vperm.xlu1 (!%p978_p5), %996, %v627_v9   ;;  %v628_v12 = vmax.f32 (!%p978_p5), %v600_v7, 1e-12  ;;  %v578_v7 = vld [vmem:[%s1234_s2 + $0x8] sm:$0xff] (!%p978_p5) }
 0x348   : > { %554 = vst [vmem:[#allocation2 + $0x68] sm:$0xff] %v522_v14  ;;  %v456_v17 = vpop.f32.mrb[14].mxu0  ;;  %643 = vperm.xlu0 (!%p978_p5), %995, %v625_v10   ;;  %v595_v10 = vld [vmem:[#allocation2 + $0x10] sm:$0xff] (!%p978_p5) }
 0x349   : > { %v523_v18 = vadd.f32 %v456_v17, %v247_v15  ;;  %v458_v19 = vpop.f32.mrb[15].mxu0  ;;  %v602_v15 = vld [vmem:[#allocation2 + $0x48] sm:$0xff] (!%p978_p5) }
 0x34a   : > { %v524_v20 = vadd.f32 %v458_v19, %v248_v16  ;;  %v629_v17 = vmax.f32 (!%p978_p5), %v602_v15, 1e-12  ;;  %vm757_vm9 = vcmp.gt.f32.partialorder (!%p978_p5), %v602_v15, 0.0 }
 0x34b   : > { %555 = vst [vmem:[#allocation2 + $0x70] sm:$0xff] %v523_v18  ;;  %v604_v14 = vld [vmem:[#allocation2 + $0x58] sm:$0xff] (!%p978_p5)  ;;  %658 = vperm.xlu1 (!%p978_p5), %996, %v628_v12   ;;  %v866_v12 = vmul.f32 (!%p978_p5), 0.0, %v578_v7 }
 0x34c   : > { %556 = vst [vmem:[#allocation2 + $0x78] sm:$0xff] %v524_v20  ;;  %v462_v23 = vpop.f32.mrb[0].mxu1  ;;  %648 = vperm.xlu0 (!%p978_p5), %995, %v626_v13   ;;  %v630_v16 = vmax.f32 (!%p978_p5), %v604_v14, 1e-12  ;;  %vm758_vm8 = vcmp.gt.f32.partialorder (!%p978_p5), %v604_v14, 0.0  ;;  %v580_v14 = vld [vmem:[%s1234_s2 + $0x18] sm:$0xff] (!%p978_p5) }
 0x34d   : > { %v525_v24 = vadd.f32 %v462_v23, %v249_v21  ;;  %v464_v25 = vpop.f32.mrb[1].mxu1 }
 0x34e   : > { %v526_v26 = vadd.f32 %v464_v25, %v250_v22 }
 0x34f   : > { %557 = vst [vmem:[#allocation2 + $0x80] sm:$0xff] %v525_v24  ;;  %v606_v19 = vld [vmem:[#allocation2 + $0x68] sm:$0xff] (!%p978_p5)  ;;  %668 = vperm.xlu1 (!%p978_p5), %996, %v630_v16  }
 0x350   : > { %558 = vst [vmem:[#allocation2 + $0x88] sm:$0xff] %v526_v26  ;;  %v468_v29 = vpop.f32.mrb[2].mxu1  ;;  %663 = vperm.xlu0 (!%p978_p5), %995, %v629_v17   ;;  %v631_v21 = vmax.f32 (!%p978_p5), %v606_v19, 1e-12  ;;  %vm759_vm11 = vcmp.gt.f32.partialorder (!%p978_p5), %v606_v19, 0.0 }
 0x351   : > { %v527_v30 = vadd.f32 %v468_v29, %v251_v27  ;;  %v470_v31 = vpop.f32.mrb[3].mxu1 }
 0x352   : > { %v528_v32 = vadd.f32 %v470_v31, %v252_v28 }
 0x353   : > { %559 = vst [vmem:[#allocation2 + $0x90] sm:$0xff] %v527_v30  ;;  %v608_v18 = vld [vmem:[#allocation2 + $0x78] sm:$0xff] (!%p978_p5) }
 0x354   : > { %560 = vst [vmem:[#allocation2 + $0x98] sm:$0xff] %v528_v32  ;;  %v474_v35 = vpop.f32.mrb[4].mxu1  ;;  %v632_v20 = vmax.f32 (!%p978_p5), %v608_v18, 1e-12  ;;  %673 = vperm.xlu0 (!%p978_p5), %995, %v631_v21   ;;  %vm760_vm10 = vcmp.gt.f32.partialorder (!%p978_p5), %v608_v18, 0.0 }
 0x355   : > { %v529_v36 = vadd.f32 %v474_v35, %v253_v33  ;;  %v476_v37 = vpop.f32.mrb[5].mxu1 }
 0x356   : > { %v530_v38 = vadd.f32 %v476_v37, %v254_v34  ;;  %678 = vperm.xlu1 (!%p978_p5), %996, %v632_v20   ;;  %v579_v20 = vld [vmem:[%s1234_s2 + $0x10] sm:$0xff] (!%p978_p5) }
 0x357   : > { %561 = vst [vmem:[#allocation2 + $0xa0] sm:$0xff] %v529_v36  ;;  %v610_v23 = vld [vmem:[#allocation2 + $0x88] sm:$0xff] (!%p978_p5) }
 0x358   : > { %562 = vst [vmem:[#allocation2 + $0xa8] sm:$0xff] %v530_v38  ;;  %v480_v41 = vpop.f32.mrb[6].mxu1  ;;  %v633_v25 = vmax.f32 (!%p978_p5), %v610_v23, 1e-12  ;;  %v770_v38 = vsel (!%p978_p5), %vm754_vm4, 1, %v1039_v8  ;;  %vm761_vm13 = vcmp.gt.f32.partialorder (!%p978_p5), %v610_v23, 0.0 }
 0x359   : > { %v531_v42 = vadd.f32 %v480_v41, %v255_v39  ;;  %v482_v43 = vpop.f32.mrb[7].mxu1  ;;  %v769_v39 = vsel (!%p978_p5), %vm753_vm5, 1, %v1039_v8  ;;  %v771_v41 = vsel (!%p978_p5), %vm755_vm7, 1, %v1039_v8  ;;  %v597_v23 = vld [vmem:[#allocation2 + $0x20] sm:$0xff] (!%p978_p5) }
 0x35a   : > { %v532_v44 = vadd.f32 %v482_v43, %v256_v40  ;;  %683 = vperm.xlu0 (!%p978_p5), %995, %v633_v25   ;;  %v772_v40 = vsel (!%p978_p5), %vm756_vm6, 1, %v1039_v8  ;;  %v773_v43 = vsel (!%p978_p5), %vm757_vm9, 1, %v1039_v8 }
 0x35b   : > { %563 = vst [vmem:[#allocation2 + $0xb0] sm:$0xff] %v531_v42  ;;  %v612_v22 = vld [vmem:[#allocation2 + $0x98] sm:$0xff] (!%p978_p5)  ;;  %v774_v42 = vsel (!%p978_p5), %vm758_vm8, 1, %v1039_v8 }
 0x35c   : > { %564 = vst [vmem:[#allocation2 + $0xb8] sm:$0xff] %v532_v44  ;;  %v486_v47 = vpop.f32.mrb[8].mxu1  ;;  %v634_v24 = vmax.f32 (!%p978_p5), %v612_v22, 1e-12  ;;  %v776_v44 = vsel (!%p978_p5), %vm760_vm10, 1, %v1039_v8  ;;  %vm762_vm12 = vcmp.gt.f32.partialorder (!%p978_p5), %v612_v22, 0.0 }
 0x35d   : > { %v533_v48 = vadd.f32 %v486_v47, %v257_v45  ;;  %v488_v49 = vpop.f32.mrb[9].mxu1  ;;  %v775_v45 = vsel (!%p978_p5), %vm759_vm11, 1, %v1039_v8  ;;  %v777_v47 = vsel (!%p978_p5), %vm761_vm13, 1, %v1039_v8  ;;  %v599_v22 = vld [vmem:[#allocation2 + $0x30] sm:$0xff] (!%p978_p5) }
 0x35e   : > { %v534_v50 = vadd.f32 %v488_v49, %v258_v46  ;;  %688 = vperm.xlu1 (!%p978_p5), %996, %v634_v24   ;;  %v778_v46 = vsel (!%p978_p5), %vm762_vm12, 1, %v1039_v8 }
 0x35f   : > { %565 = vst [vmem:[#allocation2 + $0xc0] sm:$0xff] %v533_v48  ;;  %v614_v27 = vld [vmem:[#allocation2 + $0xa8] sm:$0xff] (!%p978_p5) }
 0x360   : > { %566 = vst [vmem:[#allocation2 + $0xc8] sm:$0xff] %v534_v50  ;;  %v492_v53 = vpop.f32.mrb[10].mxu1  ;;  %v635_v29 = vmax.f32 (!%p978_p5), %v614_v27, 1e-12  ;;  %vm763_vm15 = vcmp.gt.f32.partialorder (!%p978_p5), %v614_v27, 0.0 }
 0x361   : > { %v535_v54 = vadd.f32 %v492_v53, %v259_v51  ;;  %v494_v55 = vpop.f32.mrb[11].mxu1  ;;  %v779_v49 = vsel (!%p978_p5), %vm763_vm15, 1, %v1039_v8 }
 0x362   : > { %v536_v56 = vadd.f32 %v494_v55, %v260_v52  ;;  %693 = vperm.xlu0 (!%p978_p5), %995, %v635_v29   ;;  %v867_v29 = vmul.f32 (!%p978_p5), 0.0, %v579_v20 }
 0x363   : > { %567 = vst [vmem:[#allocation2 + $0xd0] sm:$0xff] %v535_v54  ;;  %v616_v26 = vld [vmem:[#allocation2 + $0xb8] sm:$0xff] (!%p978_p5) }
 0x364   : > { %568 = vst [vmem:[#allocation2 + $0xd8] sm:$0xff] %v536_v56  ;;  %v498_v59 = vpop.f32.mrb[12].mxu1  ;;  %v636_v28 = vmax.f32 (!%p978_p5), %v616_v26, 1e-12  ;;  %vm764_vm14 = vcmp.gt.f32.partialorder (!%p978_p5), %v616_v26, 0.0  ;;  %v868_v26 = vmul.f32 (!%p978_p5), 0.0, %v580_v14 }
 0x365   : > { %v537_v60 = vadd.f32 %v498_v59, %v261_v57  ;;  %v500_v61 = vpop.f32.mrb[13].mxu1  ;;  %v780_v48 = vsel (!%p978_p5), %vm764_vm14, 1, %v1039_v8 }
 0x366   : > { %v538_v62 = vadd.f32 %v500_v61, %v262_v58  ;;  %576 = sbr.rel (%p978_p5) target bundleno = 1051 (0x41b), region = 40  ;;  %698 = vperm.xlu1 (!%p978_p5), %996, %v636_v28  }
 0x367   : > { %569 = vst [vmem:[#allocation2 + $0xe0] sm:$0xff] %v537_v60  ;;  %v618_v31 = vld [vmem:[#allocation2 + $0xc8] sm:$0xff] (!%p978_p5) }
 0x368   : > { %570 = vst [vmem:[#allocation2 + $0xe8] sm:$0xff] %v538_v62  ;;  %v504_v1 = vpop.f32.mrb[14].mxu1  ;;  %v637_v33 = vmax.f32 (!%p978_p5), %v618_v31, 1e-12  ;;  %vm765_vm1 = vcmp.gt.f32.partialorder (!%p978_p5), %v618_v31, 0.0 }
 0x369   : > { %v539_v2 = vadd.f32 %v504_v1, %v263_v63  ;;  %v506_v3 = vpop.f32.mrb[15].mxu1  ;;  %v781_v51 = vsel (!%p978_p5), %vm765_vm1, 1, %v1039_v8 }
 0x36a   : > { %v540_v4 = vadd.f32 %v506_v3, %v264_v0  ;;  %703 = vperm.xlu0 (!%p978_p5), %995, %v637_v33  }
 0x36b   : > { %571 = vst [vmem:[#allocation2 + $0xf0] sm:$0xff] %v539_v2  ;;  %v620_v30 = vld [vmem:[#allocation2 + $0xd8] sm:$0xff] (!%p978_p5) }
 0x36c   : > { %572 = vst [vmem:[#allocation2 + $0xf8] sm:$0xff] %v540_v4  ;;  %v638_v32 = vmax.f32 (!%p978_p5), %v620_v30, 1e-12  ;;  %vm766_vm0 = vcmp.gt.f32.partialorder (!%p978_p5), %v620_v30, 0.0  ;;  %v582_v30 = vld [vmem:[%s1234_s2 + $0x28] sm:$0xff] (!%p978_p5) }
 0x36d   : > { %v782_v50 = vsel %vm766_vm0, 1, %v1039_v8 }
 0x36e   : > { %708 = vperm.xlu1 %996, %v638_v32  }
 0x36f   : > { %v622_v35 = vld [vmem:[#allocation2 + $0xe8] sm:$0xff] }
 0x370   : > { %v639_v37 = vmax.f32 %v622_v35, 1e-12  ;;  %vm767_vm3 = vcmp.gt.f32.partialorder %v622_v35, 0.0 }
 0x371   : > { %v783_v53 = vsel %vm767_vm3, 1, %v1039_v8 }
 0x372   : > { %713 = vperm.xlu0 %995, %v639_v37  }
 0x373   : > { %v624_v34 = vld [vmem:[#allocation2 + $0xf8] sm:$0xff] }
 0x374   : > { %v640_v36 = vmax.f32 %v624_v34, 1e-12  ;;  %vm768_vm2 = vcmp.gt.f32.partialorder %v624_v34, 0.0 }
 0x375   : > { %v784_v52 = vsel %vm768_vm2, 1, %v1039_v8  ;;  %v577_v8 = vld [vmem:[%s1234_s2] sm:$0xff] }
 0x376   : > { %718 = vperm.xlu1 %996, %v640_v36   ;;  %786 = vperm.xlu0 %995, %v769_v39   ;;  %v865_v13 = vmul.f32 0.0, %v577_v8  ;;  %v581_v36 = vld [vmem:[%s1234_s2 + $0x20] sm:$0xff] }
 0x377   : > { %v601_v39 = vld [vmem:[#allocation2 + $0x40] sm:$0xff] }
 0x37a   : > { %789 = vperm.xlu1 %996, %v770_v38   ;;  %792 = vperm.xlu0 %995, %v771_v41   ;;  %v603_v38 = vld [vmem:[#allocation2 + $0x50] sm:$0xff] }
 0x37e   : > { %795 = vperm.xlu1 %996, %v772_v40   ;;  %798 = vperm.xlu0 %995, %v773_v43  }
 0x382   : > { %801 = vperm.xlu1 %996, %v774_v42   ;;  %804 = vperm.xlu0 %995, %v775_v45   ;;  %v870_v42 = vmul.f32 0.0, %v582_v30  ;;  %v869_v45 = vmul.f32 0.0, %v581_v36 }
 0x386   : > { %807 = vperm.xlu1 %996, %v776_v44   ;;  %810 = vperm.xlu0 %995, %v777_v47  }
 0x38a   : > { %813 = vperm.xlu1 %996, %v778_v46   ;;  %816 = vperm.xlu0 %995, %v779_v49   ;;  %v584_v46 = vld [vmem:[%s1234_s2 + $0x38] sm:$0xff] }
 0x38e   : > { %819 = vperm.xlu1 %996, %v780_v48   ;;  %822 = vperm.xlu0 %995, %v781_v51  }
 0x392   : > { %825 = vperm.xlu1 %996, %v782_v50   ;;  %828 = vperm.xlu0 %995, %v783_v53  }
 0x396   : > { %831 = vperm.xlu1 %996, %v784_v52   ;;  %v583_v52 = vld [vmem:[%s1234_s2 + $0x30] sm:$0xff] }
 0x3c6   : > { %v654_v54 = vpop.permute.xlu1 %653 }
 0x3c7   : > { %v644_v55 = vpop.permute.xlu0 %643 }
 0x3c8   : > { %997 = vrcp.f32 %v644_v55  ;;  %v605_v55 = vld [vmem:[#allocation2 + $0x60] sm:$0xff] }
 0x3ca   : > { %v659_v56 = vpop.permute.xlu1 %658 }
 0x3cb   : > { %v649_v57 = vpop.permute.xlu0 %648 }
 0x3cc   : > { %999 = vrcp.f32 %v649_v57 }
 0x3cd   : > { %1001 = vrcp.f32 %v654_v54  ;;  %v607_v54 = vld [vmem:[#allocation2 + $0x70] sm:$0xff] }
 0x3ce   : > { %v669_v58 = vpop.permute.xlu1 %668  ;;  %1003 = vrcp.f32 %v659_v56 }
 0x3cf   : > { %v664_v59 = vpop.permute.xlu0 %663  ;;  %1005 = vrcp.f32 %v669_v58  ;;  %v872_v58 = vmul.f32 0.0, %v584_v46 }
 0x3d0   : > { %1007 = vrcp.f32 %v664_v59 }
 0x3d2   : > { %v998_v4 = vpop.eup %997 }
 0x3d3   : > { %v674_v61 = vpop.permute.xlu0 %673  ;;  %v722_v19 = vmul.f32 %v998_v4, %v593_v11 }
 0x3d5   : > { %v679_v60 = vpop.permute.xlu1 %678 }
 0x3d6   : > { %v1000_v9 = vpop.eup %999  ;;  %1009 = vrcp.f32 %v679_v60 }
 0x3d7   : > { %1011 = vrcp.f32 %v674_v61  ;;  %v1002_v15 = vpop.eup %1001  ;;  %v724_v17 = vmul.f32 %v1000_v9, %v595_v10  ;;  %v871_v61 = vmul.f32 0.0, %v583_v52  ;;  %v609_v9 = vld [vmem:[#allocation2 + $0x80] sm:$0xff] }
 0x3d8   : > { %v1004_v21 = vpop.eup %1003  ;;  %v726_v34 = vmul.f32 %v1002_v15, %v597_v23  ;;  %v613_v23 = vld [vmem:[#allocation2 + $0xa0] sm:$0xff] }
 0x3d9   : > { %v684_v63 = vpop.permute.xlu0 %683  ;;  %v1006_v31 = vpop.eup %1005  ;;  %v728_v32 = vmul.f32 %v1004_v21, %v599_v22  ;;  %v588_v21 = vld [vmem:[%s1234_s2 + $0x58] sm:$0xff] }
 0x3da   : > { %v1008_v37 = vpop.eup %1007  ;;  %v732_v48 = vmul.f32 %v1006_v31, %v603_v38  ;;  %v619_v38 = vld [vmem:[#allocation2 + $0xd0] sm:$0xff] }
 0x3db   : > { %v730_v50 = vmul.f32 %v1008_v37, %v601_v39  ;;  %v617_v39 = vld [vmem:[#allocation2 + $0xc0] sm:$0xff] }
 0x3dd   : > { %v689_v62 = vpop.permute.xlu1 %688 }
 0x3de   : > { %1013 = vrcp.f32 %v689_v62  ;;  %v586_v62 = vld [vmem:[%s1234_s2 + $0x48] sm:$0xff] }
 0x3df   : > { %1015 = vrcp.f32 %v684_v63 }
 0x3e0   : > { %v1010_v47 = vpop.eup %1009 }
 0x3e1   : > { %v694_v1 = vpop.permute.xlu0 %693  ;;  %v1012_v53 = vpop.eup %1011 }
 0x3e2   : > { %v734_v4 = vmul.f32 %v1012_v53, %v605_v55  ;;  %v621_v55 = vld [vmem:[#allocation2 + $0xe0] sm:$0xff] }
 0x3e5   : > { %v699_v0 = vpop.permute.xlu1 %698 }
 0x3e6   : > { %1017 = vrcp.f32 %v699_v0  ;;  %v736_v0 = vmul.f32 %v1010_v47, %v607_v54  ;;  %v623_v54 = vld [vmem:[#allocation2 + $0xf0] sm:$0xff] }
 0x3e7   : > { %1019 = vrcp.f32 %v694_v1 }
 0x3e8   : > { %v1014_v63 = vpop.eup %1013 }
 0x3e9   : > { %v1123_v3 = vpop.permute.xlu0 %703 }
 0x3ed   : > { %v1121_v2 = vpop.permute.xlu1 %708 }
 0x3ee   : > { %1021 = vrcp.f32 %v1121_v2  ;;  %v585_v2 = vld [vmem:[%s1234_s2 + $0x40] sm:$0xff] }
 0x3ef   : > { %1023 = vrcp.f32 %v1123_v3  ;;  %v611_v3 = vld [vmem:[#allocation2 + $0x90] sm:$0xff]  ;;  %v873_v15 = vmul.f32 0.0, %v585_v2 }
 0x3f1   : > { %v1127_v6 = vpop.permute.xlu0 %713 }
 0x3f5   : > { %v1125_v5 = vpop.permute.xlu1 %718  ;;  %v787_v18 = vpop.permute.xlu0 %786 }
 0x3f6   : > { %vm833_vm5 = vcmp.eq.s32.totalorder %v787_v18, 1  ;;  %1025 = vrcp.f32 %v1125_v5  ;;  %v587_v5 = vld [vmem:[%s1234_s2 + $0x50] sm:$0xff] }
 0x3f7   : > { %v849_v25 = vsel %vm833_vm5, %v722_v19, %v577_v8  ;;  %v1016_v8 = vpop.eup %1015  ;;  %1027 = vrcp.f32 %v1127_v6  ;;  %v615_v6 = vld [vmem:[#allocation2 + $0xb0] sm:$0xff] }
 0x3f8   : > { %v881_v28 = vadd.f32 %v865_v13, %v849_v25  ;;  %v738_v19 = vmul.f32 %v1016_v8, %v609_v9 }
 0x3f9   : > { %v790_v16 = vpop.permute.xlu1 %789  ;;  %v793_v35 = vpop.permute.xlu0 %792 }
 0x3fa   : > { %vm834_vm4 = vcmp.eq.s32.totalorder %v790_v16, 1  ;;  %897 = vst [vmem:[%s1235_s3] sm:$0xff] %v881_v28  ;;  %vm835_vm7 = vcmp.eq.s32.totalorder %v793_v35, 1  ;;  %v1018_v16 = vpop.eup %1017  ;;  %v876_v28 = vmul.f32 0.0, %v588_v21  ;;  %v590_v35 = vld [vmem:[%s1234_s2 + $0x68] sm:$0xff] }
 0x3fb   : > { %v850_v24 = vsel %vm834_vm4, %v724_v17, %v578_v7  ;;  %v851_v41 = vsel %vm835_vm7, %v726_v34, %v579_v20  ;;  %v740_v17 = vmul.f32 %v1014_v63, %v611_v3  ;;  %v1020_v22 = vpop.eup %1019  ;;  %v744_v31 = vmul.f32 %v1018_v16, %v615_v6 }
 0x3fc   : > { %v882_v27 = vadd.f32 %v866_v12, %v850_v24  ;;  %v883_v44 = vadd.f32 %v867_v29, %v851_v41  ;;  %v874_v12 = vmul.f32 0.0, %v586_v62  ;;  %v875_v29 = vmul.f32 0.0, %v587_v5 }
 0x3fd   : > { %v796_v33 = vpop.permute.xlu1 %795  ;;  %v799_v51 = vpop.permute.xlu0 %798 }
 0x3fe   : > { %898 = vst [vmem:[%s1235_s3 + $0x8] sm:$0xff] %v882_v27  ;;  %vm836_vm6 = vcmp.eq.s32.totalorder %v796_v33, 1  ;;  %899 = vst [vmem:[%s1235_s3 + $0x10] sm:$0xff] %v883_v44  ;;  %vm837_vm9 = vcmp.eq.s32.totalorder %v799_v51, 1  ;;  %v742_v33 = vmul.f32 %v1020_v22, %v613_v23  ;;  %v878_v44 = vmul.f32 0.0, %v590_v35  ;;  %v592_v51 = vld [vmem:[%s1234_s2 + $0x78] sm:$0xff] }
 0x3ff   : > { %v852_v40 = vsel %vm836_vm6, %v728_v32, %v580_v14  ;;  %v853_v57 = vsel %vm837_vm9, %v730_v50, %v581_v36  ;;  %v589_v36 = vld [vmem:[%s1234_s2 + $0x60] sm:$0xff] }
 0x400   : > { %v884_v43 = vadd.f32 %v868_v26, %v852_v40  ;;  %v885_v60 = vadd.f32 %v869_v45, %v853_v57  ;;  %v877_v45 = vmul.f32 0.0, %v589_v36 }
 0x401   : > { %v802_v49 = vpop.permute.xlu1 %801  ;;  %v805_v7 = vpop.permute.xlu0 %804 }
 0x402   : > { %900 = vst [vmem:[%s1235_s3 + $0x18] sm:$0xff] %v884_v43  ;;  %vm838_vm8 = vcmp.eq.s32.totalorder %v802_v49, 1  ;;  %901 = vst [vmem:[%s1235_s3 + $0x20] sm:$0xff] %v885_v60  ;;  %vm839_vm11 = vcmp.eq.s32.totalorder %v805_v7, 1  ;;  %v880_v60 = vmul.f32 0.0, %v592_v51 }
 0x403   : > { %v854_v56 = vsel %vm838_vm8, %v732_v48, %v582_v30  ;;  %v855_v11 = vsel %vm839_vm11, %v734_v4, %v583_v52  ;;  %v1022_v30 = vpop.eup %1021  ;;  %v591_v52 = vld [vmem:[%s1234_s2 + $0x70] sm:$0xff] }
 0x404   : > { %v886_v59 = vadd.f32 %v870_v42, %v854_v56  ;;  %v887_v14 = vadd.f32 %v871_v61, %v855_v11  ;;  %v1024_v37 = vpop.eup %1023  ;;  %v748_v47 = vmul.f32 %v1022_v30, %v619_v38  ;;  %v879_v61 = vmul.f32 0.0, %v591_v52 }
 0x405   : > { %v808_v1 = vpop.permute.xlu1 %807  ;;  %v811_v20 = vpop.permute.xlu0 %810  ;;  %v746_v49 = vmul.f32 %v1024_v37, %v617_v39 }
 0x406   : > { %902 = vst [vmem:[%s1235_s3 + $0x28] sm:$0xff] %v886_v59  ;;  %vm840_vm10 = vcmp.eq.s32.totalorder %v808_v1, 1  ;;  %903 = vst [vmem:[%s1235_s3 + $0x30] sm:$0xff] %v887_v14  ;;  %vm841_vm13 = vcmp.eq.s32.totalorder %v811_v20, 1 }
 0x407   : > { %v856_v10 = vsel %vm840_vm10, %v736_v0, %v584_v46  ;;  %v857_v25 = vsel %vm841_vm13, %v738_v19, %v585_v2  ;;  %v1026_v46 = vpop.eup %1025 }
 0x408   : > { %v888_v13 = vadd.f32 %v872_v58, %v856_v10  ;;  %v889_v27 = vadd.f32 %v873_v15, %v857_v25  ;;  %v1028_v53 = vpop.eup %1027 }
 0x409   : > { %v814_v18 = vpop.permute.xlu1 %813  ;;  %v817_v34 = vpop.permute.xlu0 %816  ;;  %v750_v0 = vmul.f32 %v1028_v53, %v621_v55 }
 0x40a   : > { %904 = vst [vmem:[%s1235_s3 + $0x38] sm:$0xff] %v888_v13  ;;  %vm842_vm12 = vcmp.eq.s32.totalorder %v814_v18, 1  ;;  %905 = vst [vmem:[%s1235_s3 + $0x40] sm:$0xff] %v889_v27  ;;  %vm843_vm15 = vcmp.eq.s32.totalorder %v817_v34, 1 }
 0x40b   : > { %v858_v24 = vsel %vm842_vm12, %v740_v17, %v586_v62  ;;  %v859_v41 = vsel %vm843_vm15, %v742_v33, %v587_v5  ;;  %v752_v62 = vmul.f32 %v1026_v46, %v623_v54 }
 0x40c   : > { %v890_v26 = vadd.f32 %v874_v12, %v858_v24  ;;  %v891_v43 = vadd.f32 %v875_v29, %v859_v41 }
 0x40d   : > { %v820_v32 = vpop.permute.xlu1 %819  ;;  %v823_v50 = vpop.permute.xlu0 %822 }
 0x40e   : > { %906 = vst [vmem:[%s1235_s3 + $0x48] sm:$0xff] %v890_v26  ;;  %vm844_vm14 = vcmp.eq.s32.totalorder %v820_v32, 1  ;;  %907 = vst [vmem:[%s1235_s3 + $0x50] sm:$0xff] %v891_v43  ;;  %vm845_vm1 = vcmp.eq.s32.totalorder %v823_v50, 1 }
 0x40f   : > { %v860_v40 = vsel %vm844_vm14, %v744_v31, %v588_v21  ;;  %v861_v57 = vsel %vm845_vm1, %v746_v49, %v589_v36 }
 0x410   : > { %v892_v42 = vadd.f32 %v876_v28, %v860_v40  ;;  %v893_v59 = vadd.f32 %v877_v45, %v861_v57 }
 0x411   : > { %v826_v48 = vpop.permute.xlu1 %825  ;;  %v829_v1 = vpop.permute.xlu0 %828 }
 0x412   : > { %908 = vst [vmem:[%s1235_s3 + $0x58] sm:$0xff] %v892_v42  ;;  %vm846_vm0 = vcmp.eq.s32.totalorder %v826_v48, 1  ;;  %909 = vst [vmem:[%s1235_s3 + $0x60] sm:$0xff] %v893_v59  ;;  %vm847_vm3 = vcmp.eq.s32.totalorder %v829_v1, 1 }
 0x413   : > { %v862_v56 = vsel %vm846_vm0, %v748_v47, %v590_v35  ;;  %v863_v7 = vsel %vm847_vm3, %v750_v0, %v591_v52 }
 0x414   : > { %v894_v58 = vadd.f32 %v878_v44, %v862_v56  ;;  %v895_v8 = vadd.f32 %v879_v61, %v863_v7 }
 0x415   : > { %v832_v63 = vpop.permute.xlu1 %831 }
 0x416   : > { %910 = vst [vmem:[%s1235_s3 + $0x68] sm:$0xff] %v894_v58  ;;  %vm848_vm2 = vcmp.eq.s32.totalorder %v832_v63, 1  ;;  %911 = vst [vmem:[%s1235_s3 + $0x70] sm:$0xff] %v895_v8 }
 0x417   : > { %v864_v4 = vsel %vm848_vm2, %v752_v62, %v592_v51 }
 0x418   : > { %v896_v2 = vadd.f32 %v880_v60, %v864_v4 }
 0x41a   : > { %912 = vst [vmem:[%s1235_s3 + $0x78] sm:$0xff] %v896_v2 }
 0x41b PF: > { %s13_s12 = sadd.s32 1, %s1035_s12  }
 0x41c   : > { %p10_p6 = scmp.ge.s32.totalorder %s13_s12, 4  }
 0x41e   :  { %12 = sbr.rel (!%p10_p6) target bundleno = 1 (0x1), region = 69 }

</bundles_post_ra>
